<compile_context>
chip_gen: v5e
topology: v5e:2x2
jax: 0.10.0
libtpu: 0.0.40
codegen_flags: <defaults>
</compile_context>

<pallas_src>
import numpy as np
import jax
import jax.numpy as jnp
from jax.experimental import pallas as pl
from jax.experimental.pallas import tpu as pltpu

EPS = 1e-5


# ---------------------------------------------------------------------------
# Fused kernel: [BN -> ReLU -> 1x1 conv] x3 (shared params) + skip + bilinear x2
# Operates entirely on the packed (N*C, H*W) layout (row = n*C + c).
# ---------------------------------------------------------------------------
def _make_fused_kernel(n, c):
    def kernel(x_ref, k_ref, w_ref, b_ref, g_ref, bb_ref, o_ref):
        hw = x_ref.shape[1]
        inv_cnt = 1.0 / (n * hw)            # BN averages over N*H*W elements per channel

        x = x_ref[...]                      # (N*C, HW)
        kmat = k_ref[...]                   # (HW, 4*HW) bilinear Kronecker matrix
        wblk = w_ref[...]                   # (N*C, N*C) = I_N (x) conv_w
        b_col = b_ref[...]                  # (N*C, 1) conv bias per row
        g_col = g_ref[...]                  # (N*C, 1) BN gamma per row
        bt_col = bb_ref[...]                # (N*C, 1) BN beta per row

        def per_channel_totals(col):
            # (N*C, 1) per-row lane-sums -> per-channel totals, broadcast back per row.
            tot = col[0:c, :]
            for m in range(1, n):
                tot = tot + col[m * c:(m + 1) * c, :]
            return tot if n == 1 else jnp.concatenate([tot] * n, axis=0)

        t = x
        for _ in range(3):                  # shared BN -> ReLU -> 1x1 conv, applied 3x
            row_s = jnp.sum(t, axis=-1, keepdims=True)       # (N*C, 1) one lane reduce
            row_q = jnp.sum(t * t, axis=-1, keepdims=True)   # (N*C, 1) one lane reduce
            mean = per_channel_totals(row_s) * inv_cnt
            msq = per_channel_totals(row_q) * inv_cnt
            var = jnp.maximum(msq - mean * mean, 0.0)        # biased, training-mode BN
            scale = g_col * jax.lax.rsqrt(var + EPS)
            shift = bt_col - mean * scale
            act = jnp.maximum(t * scale + shift, 0.0)        # BN + ReLU, full occupancy
            # 1x1 conv over channels == block-diagonal (I_N (x) W) matmul on packed rows.
            t = jnp.dot(wblk, act, preferred_element_type=jnp.float32) + b_col

        res = t + x                                          # residual skip
        # Bilinear x2 upsample of every (n, c) slab: one lane-dense MXU matmul,
        # output (N*C, 4*HW) stored with full-width unmasked vst.
        o_ref[...] = jnp.dot(res, kmat, preferred_element_type=jnp.float32)

    return kernel


# ---------------------------------------------------------------------------
# Host-side constants (numpy; const-folded under jit)
# ---------------------------------------------------------------------------
def _bilinear_matrix(n_in):
    """Exact PyTorch F.interpolate(scale_factor=2, mode='bilinear', align_corners=False)."""
    n_out = 2 * n_in
    a = np.zeros((n_out, n_in), np.float32)
    for i in range(n_out):
        src = max((i + 0.5) * 0.5 - 0.5, 0.0)
        i0 = int(np.floor(src))
        lam = src - i0
        a[i, min(i0, n_in - 1)] += 1.0 - lam
        a[i, min(i0 + 1, n_in - 1)] += lam
    return a


def _kron_bilinear(h, w):
    ah = _bilinear_matrix(h)                # (2H, H)
    aw = _bilinear_matrix(w)                # (2W, W)
    # K[h*W + w, p*2W + q] = ah[p, h] * aw[q, w]
    k = np.einsum('ph,qw->hwpq', ah, aw).reshape(h * w, 4 * h * w)
    return np.ascontiguousarray(k.astype(np.float32))


# ---------------------------------------------------------------------------
# Wrapper (only pure reshapes around the kernel; no NCHW<->NHWC transposes)
# ---------------------------------------------------------------------------
def mask_branch_forward(x_nchw, conv_w, conv_b, bn_g, bn_b):
    N, C, H, W = x_nchw.shape
    HW, HW4 = H * W, 4 * H * W

    x2d = x_nchw.astype(jnp.float32).reshape(N * C, HW)       # pure reshape
    kmat = jnp.asarray(_kron_bilinear(H, W))                  # (HW, 4*HW)
    w_blk = jnp.kron(jnp.eye(N, dtype=jnp.float32), conv_w.astype(jnp.float32))
    b_col = jnp.tile(conv_b.astype(jnp.float32), N).reshape(N * C, 1)
    g_col = jnp.tile(bn_g.astype(jnp.float32), N).reshape(N * C, 1)
    bt_col = jnp.tile(bn_b.astype(jnp.float32), N).reshape(N * C, 1)

    vmem = pl.BlockSpec(memory_space=pltpu.MemorySpace.VMEM)  # full-array, single-buffered
    out2d = pl.pallas_call(
        _make_fused_kernel(N, C),
        out_shape=jax.ShapeDtypeStruct((N * C, HW4), jnp.float32),
        in_specs=[vmem, vmem, vmem, vmem, vmem, vmem],
        out_specs=vmem,
    )(x2d, kmat, w_blk, b_col, g_col, bt_col)

    return out2d.reshape(N, C, 2 * H, 2 * W)                  # pure reshape


# ---------------------------------------------------------------------------
# Pure-JAX reference (independent formulation, high-precision matmuls)
# ---------------------------------------------------------------------------
def reference(x, conv_w, conv_b, bn_g, bn_b):
    hp = jax.lax.Precision.HIGHEST

    def bn(t):
        mean = t.mean(axis=(0, 2, 3), keepdims=True)
        var = ((t - mean) ** 2).mean(axis=(0, 2, 3), keepdims=True)
        return (t - mean) / jnp.sqrt(var + EPS) * bn_g.reshape(1, -1, 1, 1) \
               + bn_b.reshape(1, -1, 1, 1)

    def conv(t):
        return jnp.einsum('nchw,oc->nohw', t, conv_w, precision=hp) \
               + conv_b.reshape(1, -1, 1, 1)

    t = x
    for _ in range(3):
        t = conv(jnp.maximum(bn(t), 0.0))
    t = t + x
    ah = jnp.asarray(_bilinear_matrix(t.shape[2]))
    aw = jnp.asarray(_bilinear_matrix(t.shape[3]))
    return jnp.einsum('ph,nchw,qw->ncpq', ah, t, aw, precision=hp)


if __name__ == "__main__":
    N, C, H, W = 2, 4, 16, 16
    key = jax.random.PRNGKey(0)
    kx, kw, kb, kg, kbt = jax.random.split(key, 5)

    x = jax.random.normal(kx, (N, C, H, W), jnp.float32)
    conv_w = jax.random.normal(kw, (C, C), jnp.float32) * 0.3   # 1x1 conv (Cout, Cin)
    conv_b = jax.random.normal(kb, (C,), jnp.float32) * 0.1
    bn_g = 1.0 + 0.1 * jax.random.normal(kg, (C,), jnp.float32)
    bn_b = 0.1 * jax.random.normal(kbt, (C,), jnp.float32)

    fwd = jax.jit(mask_branch_forward)
    out = jax.block_until_ready(fwd(x, conv_w, conv_b, bn_g, bn_b))

    ref = jax.block_until_ready(reference(x, conv_w, conv_b, bn_g, bn_b))
    assert out.shape == (N, C, 2 * H, 2 * W)
    err = float(jnp.max(jnp.abs(out - ref)))
    assert err < 1e-3, f"max abs err {err}"

    print("KERNEL_OK")
</pallas_src>

<mosaic_0001>
module attributes {stable_mosaic.version = 11 : i64} {
  func.func @kernel(%arg0: memref<8x256xf32, #tpu.memory_space<vmem>>, %arg1: memref<256x1024xf32, #tpu.memory_space<vmem>>, %arg2: memref<8x8xf32, #tpu.memory_space<vmem>>, %arg3: memref<8x1xf32, #tpu.memory_space<vmem>>, %arg4: memref<8x1xf32, #tpu.memory_space<vmem>>, %arg5: memref<8x1xf32, #tpu.memory_space<vmem>>, %arg6: memref<8x1024xf32, #tpu.memory_space<vmem>>) attributes {dimension_semantics = [], scalar_prefetch = 0 : i64, scratch_operands = 0 : i64, tpu.core_type = #tpu.core_type<tc>} {
    %c0 = arith.constant 0 : index
    %c0_0 = arith.constant 0 : index
    %0 = vector.load %arg0[%c0, %c0_0] : memref<8x256xf32, #tpu.memory_space<vmem>>, vector<8x256xf32>
    %c0_1 = arith.constant 0 : index
    %c0_2 = arith.constant 0 : index
    %1 = vector.load %arg1[%c0_1, %c0_2] : memref<256x1024xf32, #tpu.memory_space<vmem>>, vector<256x1024xf32>
    %c0_3 = arith.constant 0 : index
    %c0_4 = arith.constant 0 : index
    %2 = vector.load %arg2[%c0_3, %c0_4] : memref<8x8xf32, #tpu.memory_space<vmem>>, vector<8x8xf32>
    %c0_5 = arith.constant 0 : index
    %c0_6 = arith.constant 0 : index
    %3 = vector.load %arg3[%c0_5, %c0_6] : memref<8x1xf32, #tpu.memory_space<vmem>>, vector<8x1xf32>
    %c0_7 = arith.constant 0 : index
    %c0_8 = arith.constant 0 : index
    %4 = vector.load %arg4[%c0_7, %c0_8] : memref<8x1xf32, #tpu.memory_space<vmem>>, vector<8x1xf32>
    %c0_9 = arith.constant 0 : index
    %c0_10 = arith.constant 0 : index
    %5 = vector.load %arg5[%c0_9, %c0_10] : memref<8x1xf32, #tpu.memory_space<vmem>>, vector<8x1xf32>
    %cst = arith.constant dense<0.000000e+00> : vector<8xf32>
    %6 = vector.multi_reduction <add>, %0, %cst [1] : vector<8x256xf32> to vector<8xf32>
    %7 = vector.shape_cast %6 : vector<8xf32> to vector<8x1xf32>
    %8 = arith.mulf %0, %0 : vector<8x256xf32>
    %cst_11 = arith.constant dense<0.000000e+00> : vector<8xf32>
    %9 = vector.multi_reduction <add>, %8, %cst_11 [1] : vector<8x256xf32> to vector<8xf32>
    %10 = vector.shape_cast %9 : vector<8xf32> to vector<8x1xf32>
    %11 = vector.extract_strided_slice %7 {offsets = [0, 0], sizes = [4, 1], strides = [1, 1]} : vector<8x1xf32> to vector<4x1xf32>
    %12 = vector.extract_strided_slice %7 {offsets = [4, 0], sizes = [4, 1], strides = [1, 1]} : vector<8x1xf32> to vector<4x1xf32>
    %13 = arith.addf %11, %12 : vector<4x1xf32>
    %14 = tpu.concatenate %13, %13 in 0 : vector<4x1xf32>, vector<4x1xf32> -> vector<8x1xf32>
    %cst_12 = arith.constant 0.001953125 : f32
    %15 = vector.broadcast %cst_12 : f32 to vector<8x1xf32>
    %16 = arith.mulf %14, %15 : vector<8x1xf32>
    %17 = vector.extract_strided_slice %10 {offsets = [0, 0], sizes = [4, 1], strides = [1, 1]} : vector<8x1xf32> to vector<4x1xf32>
    %18 = vector.extract_strided_slice %10 {offsets = [4, 0], sizes = [4, 1], strides = [1, 1]} : vector<8x1xf32> to vector<4x1xf32>
    %19 = arith.addf %17, %18 : vector<4x1xf32>
    %20 = tpu.concatenate %19, %19 in 0 : vector<4x1xf32>, vector<4x1xf32> -> vector<8x1xf32>
    %cst_13 = arith.constant 0.001953125 : f32
    %21 = vector.broadcast %cst_13 : f32 to vector<8x1xf32>
    %22 = arith.mulf %20, %21 : vector<8x1xf32>
    %23 = arith.mulf %16, %16 : vector<8x1xf32>
    %24 = arith.subf %22, %23 : vector<8x1xf32>
    %cst_14 = arith.constant 0.000000e+00 : f32
    %25 = vector.broadcast %cst_14 : f32 to vector<8x1xf32>
    %26 = arith.maximumf %24, %25 : vector<8x1xf32>
    %cst_15 = arith.constant 9.99999974E-6 : f32
    %27 = vector.broadcast %cst_15 : f32 to vector<8x1xf32>
    %28 = arith.addf %26, %27 : vector<8x1xf32>
    %29 = math.rsqrt %28 : vector<8x1xf32>
    %30 = arith.mulf %4, %29 : vector<8x1xf32>
    %31 = arith.mulf %16, %30 : vector<8x1xf32>
    %32 = arith.subf %5, %31 : vector<8x1xf32>
    %33 = vector.broadcast %30 : vector<8x1xf32> to vector<8x256xf32>
    %34 = arith.mulf %0, %33 : vector<8x256xf32>
    %35 = vector.broadcast %32 : vector<8x1xf32> to vector<8x256xf32>
    %36 = arith.addf %34, %35 : vector<8x256xf32>
    %cst_16 = arith.constant 0.000000e+00 : f32
    %37 = vector.broadcast %cst_16 : f32 to vector<8x256xf32>
    %38 = arith.maximumf %36, %37 : vector<8x256xf32>
    %cst_17 = arith.constant dense<0.000000e+00> : vector<8x256xf32>
    %39 = tpu.matmul %2, %38, %cst_17 {dimension_numbers = #tpu.dot_dimension_numbers<[1], [0], [0], [1], [0, 0, 1, 1], [], []>} : vector<8x8xf32>, vector<8x256xf32>, vector<8x256xf32> -> vector<8x256xf32>
    %40 = vector.broadcast %3 : vector<8x1xf32> to vector<8x256xf32>
    %41 = arith.addf %39, %40 : vector<8x256xf32>
    %cst_18 = arith.constant dense<0.000000e+00> : vector<8xf32>
    %42 = vector.multi_reduction <add>, %41, %cst_18 [1] : vector<8x256xf32> to vector<8xf32>
    %43 = vector.shape_cast %42 : vector<8xf32> to vector<8x1xf32>
    %44 = arith.mulf %41, %41 : vector<8x256xf32>
    %cst_19 = arith.constant dense<0.000000e+00> : vector<8xf32>
    %45 = vector.multi_reduction <add>, %44, %cst_19 [1] : vector<8x256xf32> to vector<8xf32>
    %46 = vector.shape_cast %45 : vector<8xf32> to vector<8x1xf32>
    %47 = vector.extract_strided_slice %43 {offsets = [0, 0], sizes = [4, 1], strides = [1, 1]} : vector<8x1xf32> to vector<4x1xf32>
    %48 = vector.extract_strided_slice %43 {offsets = [4, 0], sizes = [4, 1], strides = [1, 1]} : vector<8x1xf32> to vector<4x1xf32>
    %49 = arith.addf %47, %48 : vector<4x1xf32>
    %50 = tpu.concatenate %49, %49 in 0 : vector<4x1xf32>, vector<4x1xf32> -> vector<8x1xf32>
    %cst_20 = arith.constant 0.001953125 : f32
    %51 = vector.broadcast %cst_20 : f32 to vector<8x1xf32>
    %52 = arith.mulf %50, %51 : vector<8x1xf32>
    %53 = vector.extract_strided_slice %46 {offsets = [0, 0], sizes = [4, 1], strides = [1, 1]} : vector<8x1xf32> to vector<4x1xf32>
    %54 = vector.extract_strided_slice %46 {offsets = [4, 0], sizes = [4, 1], strides = [1, 1]} : vector<8x1xf32> to vector<4x1xf32>
    %55 = arith.addf %53, %54 : vector<4x1xf32>
    %56 = tpu.concatenate %55, %55 in 0 : vector<4x1xf32>, vector<4x1xf32> -> vector<8x1xf32>
    %cst_21 = arith.constant 0.001953125 : f32
    %57 = vector.broadcast %cst_21 : f32 to vector<8x1xf32>
    %58 = arith.mulf %56, %57 : vector<8x1xf32>
    %59 = arith.mulf %52, %52 : vector<8x1xf32>
    %60 = arith.subf %58, %59 : vector<8x1xf32>
    %cst_22 = arith.constant 0.000000e+00 : f32
    %61 = vector.broadcast %cst_22 : f32 to vector<8x1xf32>
    %62 = arith.maximumf %60, %61 : vector<8x1xf32>
    %cst_23 = arith.constant 9.99999974E-6 : f32
    %63 = vector.broadcast %cst_23 : f32 to vector<8x1xf32>
    %64 = arith.addf %62, %63 : vector<8x1xf32>
    %65 = math.rsqrt %64 : vector<8x1xf32>
    %66 = arith.mulf %4, %65 : vector<8x1xf32>
    %67 = arith.mulf %52, %66 : vector<8x1xf32>
    %68 = arith.subf %5, %67 : vector<8x1xf32>
    %69 = vector.broadcast %66 : vector<8x1xf32> to vector<8x256xf32>
    %70 = arith.mulf %41, %69 : vector<8x256xf32>
    %71 = vector.broadcast %68 : vector<8x1xf32> to vector<8x256xf32>
    %72 = arith.addf %70, %71 : vector<8x256xf32>
    %cst_24 = arith.constant 0.000000e+00 : f32
    %73 = vector.broadcast %cst_24 : f32 to vector<8x256xf32>
    %74 = arith.maximumf %72, %73 : vector<8x256xf32>
    %cst_25 = arith.constant dense<0.000000e+00> : vector<8x256xf32>
    %75 = tpu.matmul %2, %74, %cst_25 {dimension_numbers = #tpu.dot_dimension_numbers<[1], [0], [0], [1], [0, 0, 1, 1], [], []>} : vector<8x8xf32>, vector<8x256xf32>, vector<8x256xf32> -> vector<8x256xf32>
    %76 = vector.broadcast %3 : vector<8x1xf32> to vector<8x256xf32>
    %77 = arith.addf %75, %76 : vector<8x256xf32>
    %cst_26 = arith.constant dense<0.000000e+00> : vector<8xf32>
    %78 = vector.multi_reduction <add>, %77, %cst_26 [1] : vector<8x256xf32> to vector<8xf32>
    %79 = vector.shape_cast %78 : vector<8xf32> to vector<8x1xf32>
    %80 = arith.mulf %77, %77 : vector<8x256xf32>
    %cst_27 = arith.constant dense<0.000000e+00> : vector<8xf32>
    %81 = vector.multi_reduction <add>, %80, %cst_27 [1] : vector<8x256xf32> to vector<8xf32>
    %82 = vector.shape_cast %81 : vector<8xf32> to vector<8x1xf32>
    %83 = vector.extract_strided_slice %79 {offsets = [0, 0], sizes = [4, 1], strides = [1, 1]} : vector<8x1xf32> to vector<4x1xf32>
    %84 = vector.extract_strided_slice %79 {offsets = [4, 0], sizes = [4, 1], strides = [1, 1]} : vector<8x1xf32> to vector<4x1xf32>
    %85 = arith.addf %83, %84 : vector<4x1xf32>
    %86 = tpu.concatenate %85, %85 in 0 : vector<4x1xf32>, vector<4x1xf32> -> vector<8x1xf32>
    %cst_28 = arith.constant 0.001953125 : f32
    %87 = vector.broadcast %cst_28 : f32 to vector<8x1xf32>
    %88 = arith.mulf %86, %87 : vector<8x1xf32>
    %89 = vector.extract_strided_slice %82 {offsets = [0, 0], sizes = [4, 1], strides = [1, 1]} : vector<8x1xf32> to vector<4x1xf32>
    %90 = vector.extract_strided_slice %82 {offsets = [4, 0], sizes = [4, 1], strides = [1, 1]} : vector<8x1xf32> to vector<4x1xf32>
    %91 = arith.addf %89, %90 : vector<4x1xf32>
    %92 = tpu.concatenate %91, %91 in 0 : vector<4x1xf32>, vector<4x1xf32> -> vector<8x1xf32>
    %cst_29 = arith.constant 0.001953125 : f32
    %93 = vector.broadcast %cst_29 : f32 to vector<8x1xf32>
    %94 = arith.mulf %92, %93 : vector<8x1xf32>
    %95 = arith.mulf %88, %88 : vector<8x1xf32>
    %96 = arith.subf %94, %95 : vector<8x1xf32>
    %cst_30 = arith.constant 0.000000e+00 : f32
    %97 = vector.broadcast %cst_30 : f32 to vector<8x1xf32>
    %98 = arith.maximumf %96, %97 : vector<8x1xf32>
    %cst_31 = arith.constant 9.99999974E-6 : f32
    %99 = vector.broadcast %cst_31 : f32 to vector<8x1xf32>
    %100 = arith.addf %98, %99 : vector<8x1xf32>
    %101 = math.rsqrt %100 : vector<8x1xf32>
    %102 = arith.mulf %4, %101 : vector<8x1xf32>
    %103 = arith.mulf %88, %102 : vector<8x1xf32>
    %104 = arith.subf %5, %103 : vector<8x1xf32>
    %105 = vector.broadcast %102 : vector<8x1xf32> to vector<8x256xf32>
    %106 = arith.mulf %77, %105 : vector<8x256xf32>
    %107 = vector.broadcast %104 : vector<8x1xf32> to vector<8x256xf32>
    %108 = arith.addf %106, %107 : vector<8x256xf32>
    %cst_32 = arith.constant 0.000000e+00 : f32
    %109 = vector.broadcast %cst_32 : f32 to vector<8x256xf32>
    %110 = arith.maximumf %108, %109 : vector<8x256xf32>
    %cst_33 = arith.constant dense<0.000000e+00> : vector<8x256xf32>
    %111 = tpu.matmul %2, %110, %cst_33 {dimension_numbers = #tpu.dot_dimension_numbers<[1], [0], [0], [1], [0, 0, 1, 1], [], []>} : vector<8x8xf32>, vector<8x256xf32>, vector<8x256xf32> -> vector<8x256xf32>
    %112 = vector.broadcast %3 : vector<8x1xf32> to vector<8x256xf32>
    %113 = arith.addf %111, %112 : vector<8x256xf32>
    %114 = arith.addf %113, %0 : vector<8x256xf32>
    %cst_34 = arith.constant dense<0.000000e+00> : vector<8x1024xf32>
    %115 = tpu.matmul %114, %1, %cst_34 {dimension_numbers = #tpu.dot_dimension_numbers<[1], [0], [0], [1], [0, 0, 1, 1], [], []>} : vector<8x256xf32>, vector<256x1024xf32>, vector<8x1024xf32> -> vector<8x1024xf32>
    %c0_35 = arith.constant 0 : index
    %c0_36 = arith.constant 0 : index
    %116 = vector.load %arg6[%c0_35, %c0_36] : memref<8x1024xf32, #tpu.memory_space<vmem>>, vector<8x1024xf32>
    tpu.vector_store %arg6[%c0_35, %c0_36], %115 {strides = array<i32>} : memref<8x1024xf32, #tpu.memory_space<vmem>>, vector<8x1024xf32>,
    return
  }
}

</mosaic_0001>

<bundles_post_ra>
// kernel: tile.18
= control target key start
LH: loop header
LB: loop body
LE: loop exit
PB: predicated region body
PF: predicated region fallthrough
CT: control target
= control target key end

     0   :  { %s22_s0 = inlined_call_operand.vmem [shape: f32[4], index: 0, kind: input, shape index: {}]   ;;  %s23_s1 = inlined_call_operand.vmem [shape: f32[2,4], index: 1, kind: output, shape index: {}]  }
   0x1   :  { %v4_v0 = vld [vmem:[%s22_s0] ss:$0 sm:$0xff] }
   0x2   :  { %5 = vst [vmem:[%s23_s1] sm:$0x3] %v4_v0 }

// kernel: tile.2
= control target key start
LH: loop header
LB: loop body
LE: loop exit
PB: predicated region body
PF: predicated region fallthrough
CT: control target
= control target key end

     0   :  { %s34_s8 = smov 125   ;;  %s35_s9 = smov 126   ;;  %vm7_vm0 = vcmask 7168   ;;  %s61_s0 = inlined_call_operand.vmem [shape: f32[2,4], index: 0, kind: input, shape index: {}]   ;;  %s62_s1 = inlined_call_operand.vmem [shape: f32[8,1], index: 1, kind: output, shape index: {}]  }
   0x1   :  { %v4_v0 = vld [vmem:[%s61_s0] sm:$0x3]  ;;  %s33_s0 = smov 127  }
   0x2   :  { %5 = vst [vmem:[#allocation0] sm:$0x3] %v4_v0 }
   0x9   :  { %v9_v1 = vld [vmem:[#allocation0] sm:$0x3]  }
   0xa   :  { %v21_v2 = vld [vmem:[#allocation0] sm:$0x3]   ;;  %10 = vrot.lane.b32.xlu0 %v9_v1, %s33_s0 }
   0xb   :  { %22 = vrot.lane.b32.xlu1 %v21_v2, %s34_s8  ;;  %v15_v3 = vld [vmem:[#allocation0] sm:$0x3]  }
   0xc   :  { %v6_v4 = vld [vmem:[#allocation0] sm:$0x3]  }
   0xd   :  { %8 = vst.msk [vmem:[%s62_s1] ss:$4 sm:$0x3] %vm7_vm0, %v6_v4  }
  0x12   :  { %16 = vrot.lane.b32.xlu0 %v15_v3, %s35_s9 }
  0x7c   :  { %v11_v5 = vpop.permute.xlu0 %10  }
  0x7d   :  { %v23_v6 = vpop.permute.xlu1 %22   ;;  %27 = vst.msk [vmem:[%s62_s1 + $0x1] ss:$4 sm:$0x3] %vm7_vm0, %v11_v5  }
  0x7e   :  { %29 = vst.msk [vmem:[%s62_s1 + $0x3] ss:$4 sm:$0x3] %vm7_vm0, %v23_v6  }
  0x84   :  { %v17_v7 = vpop.permute.xlu0 %16  }
  0x85   :  { %28 = vst.msk [vmem:[%s62_s1 + $0x2] ss:$4 sm:$0x3] %vm7_vm0, %v17_v7  }

// kernel: mask_branch_forward.1
= control target key start
LH: loop header
LB: loop body
LE: loop exit
PB: predicated region body
PF: predicated region fallthrough
CT: control target
= control target key end

     0   :  { %11 = vsyncpa [#allocation3], 0  ;;  %s988_s24 = smov [#allocation2]   ;;  %s989_s26 = smov 1024   ;;  %s1156_s0 = inlined_call_operand.vmem [shape: f32[8,256], index: 0, kind: input, shape index: {}]   ;;  %s1157_s1 = inlined_call_operand.hbm [shape: f32[256,1024], index: 1, kind: input, shape index: {}]   ;;  %s1158_s2 = inlined_call_operand.vmem [shape: f32[8,8], index: 2, kind: input, shape index: {}]   ;;  %s1159_s3 = inlined_call_operand.vmem [shape: f32[8,1], index: 3, kind: input, shape index: {}]   ;;  %s1160_s4 = inlined_call_operand.vmem [shape: f32[8,1], index: 4, kind: input, shape index: {}]   ;;  %s1161_s5 = inlined_call_operand.vmem [shape: f32[8,1], index: 5, kind: input, shape index: {}]   ;;  %s1162_s6 = inlined_call_operand.vmem [shape: f32[8,1024], index: 6, kind: output, shape index: {}]  }
   0x1   :  { %s18_s23 = sshll.u32 %s1157_s1, 4  ;;  %s20_s25 = sshll.u32 %s988_s24, 4  ;;  %s19_s23 = int_to_ptr.hbm [resolvable:$true] %s18_s23  ;;  %s21_s25 = int_to_ptr.vmem [resolvable:$true] %s20_s25 }
   0x2   :  { %s990_s27 = smov 64  }
   0x3   :  { %26 = dma.hbm_to_vmem [thread:$0]  %s19_s23, 32768, %s21_s25, [#allocation3], %s989_s26, %s989_s26, %s990_s27  }
   0x4   :  { %986 = dma.done.wait [#allocation3], 32768  }
   0x5   :  { %987 = vsyncadd [#allocation3], 4294934528  ;;  %v1033_v0 = vld [vmem:[%s1156_s0] sm:$0xff]  ;;  %v1038_v1 = vld [vmem:[%s1156_s0 + $0x8] sm:$0xff]  ;;  %v991_v6 = vmov 0   ;;  %vm316_vm0 = vcmask 1043456  }
   0x6   :  { %v301_v2 = vadd.f32 %v1038_v1, %v1033_v0  ;;  %v304_v3 = vmul.f32 %v1033_v0, %v1033_v0  ;;  %v305_v4 = vmul.f32 %v1038_v1, %v1038_v1  ;;  %953 = vset.pattern.permute.xlu1 %v991_v6  ;;  %954 = vset.pattern.permute.xlu2 %v991_v6  ;;  %v1051_v28 = vld [vmem:[%s1160_s4] sm:$0xff]  ;;  %vm366_vm4 = vcmask 64512  }
   0x7   :  { %955 = vset.pattern.permute.xlu0 %v991_v6  ;;  %v1057_v33 = vld [vmem:[%s1161_s5] sm:$0xff] }
   0x8   :  { %302 = vadd.xlane.f32.xlu0 %v301_v2  ;;  %v306_v5 = vadd.f32 %v305_v4, %v304_v3  ;;  %v298_v35 = vld [vmem:[%s1159_s3] sm:$0xff] }
   0x9   :  { %363 = vperm.xlu2 %954, %v298_v35   ;;  %v1068_v44 = vld [vmem:[%s1158_s2] sm:$0xff] }
  0x10   :  { %307 = vadd.xlane.f32.xlu0 %v306_v5 }
  0x63   :  { %v1074_v45 = vpop.permute.xlu2 %363 }
  0x7b   :  { %v303_v7 = vpop.xlane.xlu0 %302 }
  0x7c   :  { %v310_v8 = vrot.slane %v303_v7, 4 }
  0x7e   :  { %v312_v9 = vadd.f32 %v310_v8, %v303_v7 }
  0x80   :  { %v314_v10 = vrot.slane %v312_v9, 4 }
  0x82   :  { %v317_v13 = vsel %vm316_vm0, %v312_v9, %v314_v10 }
  0x83   :  { %v308_v11 = vpop.xlane.xlu0 %307  ;;  %v318_v15 = vmul.f32 0.001953125, %v317_v13 }
  0x84   :  { %v320_v12 = vrot.slane %v308_v11, 4 }
  0x85   :  { %v328_v19 = vmul.f32 %v318_v15, %v318_v15 }
  0x86   :  { %v322_v14 = vadd.f32 %v320_v12, %v308_v11 }
  0x88   :  { %v324_v16 = vrot.slane %v322_v14, 4 }
  0x8a   :  { %v326_v17 = vsel %vm316_vm0, %v322_v14, %v324_v16 }
  0x8b   :  { %v327_v18 = vmul.f32 0.001953125, %v326_v17 }
  0x8d   :  { %v329_v20 = vsub.f32 %v327_v18, %v328_v19 }
  0x8f   :  { %v330_v21 = vmax.f32 %v329_v20, 0.0 }
  0x91   :  { %v331_v22 = vadd.f32 1e-05, %v330_v21 }
  0x93   :  { %956 = vrsqrt.f32 %v331_v22  ;;  %vm338_vm2 = vweird.f32 %v331_v22 }
  0x99   :  { %v957_v23 = vpop.eup %956 }
  0x9a   :  { %v333_v24 = vmul.f32 %v957_v23, %v331_v22  ;;  %vm339_vm1 = vweird.f32 %v957_v23 }
  0x9b   :  { %vm340_vm3 = vmor %vm338_vm2, %vm339_vm1 }
  0x9c   :  { %v334_v25 = vmul.f32 %v957_v23, %v333_v24 }
  0x9e   :  { %v335_v26 = vmul.f32 0.5, %v334_v25 }
  0xa0   :  { %v336_v27 = vsub.f32 1.5, %v335_v26 }
  0xa2   :  { %v337_v29 = vmul.f32 %v957_v23, %v336_v27 }
  0xa4   :  { %v341_v30 = vsel %vm340_vm3, %v957_v23, %v337_v29 }
  0xa5   :  { %v342_v31 = vmul.f32 %v341_v30, %v1051_v28 }
  0xa7   :  { %347 = vperm.xlu1 %953, %v342_v31   ;;  %v343_v32 = vmul.f32 %v342_v31, %v318_v15 }
  0xa9   :  { %v344_v34 = vsub.f32 %v1057_v33, %v343_v32 }
  0xaf   :  { %354 = vperm.xlu1 %953, %v344_v34  }
 0x119   :  { %v348_v36 = vpop.permute.xlu1 %347 }
 0x11a   :  { %v350_v37 = vmul.f32 %v348_v36, %v1033_v0  ;;  %v351_v38 = vmul.f32 %v348_v36, %v1038_v1 }
 0x121   :  { %v355_v39 = vpop.permute.xlu1 %354 }
 0x122   :  { %v357_v40 = vadd.f32 %v355_v39, %v350_v37  ;;  %v358_v41 = vadd.f32 %v355_v39, %v351_v38 }
 0x124   :  { %v359_v42 = vmax.f32 %v357_v40, 0.0  ;;  %v360_v43 = vmax.f32 %v358_v41, 0.0 }
 0x126   :  { %385 = vmatpush.msra.mxu0 %v359_v42  ;;  %405 = vmatpush.msra.mxu1 %v360_v43 }
 0x127   :  { %943 = vmatmul.msk.f32.vlgmr.msra.gmra.mxu0 %vm366_vm4, %v1068_v44  ;;  %944 = vmatmul.msk.f32.vlgmr.msra.gmra.mxu1 %vm366_vm4, %v1068_v44 }
 0x1a4   :  { %v387_v46 = vpop.f32.mrf.mxu0  ;;  %v407_v47 = vpop.f32.mrf.mxu1 }
 0x1a5   :  { %v388_v48 = vadd.f32 %v387_v46, %v1074_v45  ;;  %v408_v49 = vadd.f32 %v407_v47, %v1074_v45 }
 0x1a7   :  { %v410_v50 = vadd.f32 %v408_v49, %v388_v48  ;;  %v413_v51 = vmul.f32 %v388_v48, %v388_v48  ;;  %v414_v52 = vmul.f32 %v408_v49, %v408_v49 }
 0x1a9   :  { %411 = vadd.xlane.f32.xlu2 %v410_v50  ;;  %v415_v53 = vadd.f32 %v414_v52, %v413_v51 }
 0x1ab   :  { %416 = vadd.xlane.f32.xlu0 %v415_v53 }
 0x21c   :  { %v412_v54 = vpop.xlane.xlu2 %411 }
 0x21d   :  { %v419_v55 = vrot.slane %v412_v54, 4 }
 0x21e   :  { %v417_v56 = vpop.xlane.xlu0 %416 }
 0x21f   :  { %v421_v57 = vadd.f32 %v419_v55, %v412_v54  ;;  %v428_v58 = vrot.slane %v417_v56, 4 }
 0x221   :  { %v423_v59 = vrot.slane %v421_v57, 4  ;;  %v430_v60 = vadd.f32 %v428_v58, %v417_v56 }
 0x223   :  { %v425_v61 = vsel %vm316_vm0, %v421_v57, %v423_v59  ;;  %v432_v62 = vrot.slane %v430_v60, 4 }
 0x224   :  { %v426_v63 = vmul.f32 0.001953125, %v425_v61 }
 0x225   :  { %v434_v2 = vsel %vm316_vm0, %v430_v60, %v432_v62 }
 0x226   :  { %v436_v3 = vmul.f32 %v426_v63, %v426_v63  ;;  %v435_v4 = vmul.f32 0.001953125, %v434_v2  ;;  %v161_v2 = vld [vmem:[#allocation2 + $0x3c0] sm:$0xff] }
 0x228   :  { %v437_v5 = vsub.f32 %v435_v4, %v436_v3  ;;  %v289_v3 = vld [vmem:[#allocation2 + $0x7c0] sm:$0xff] }
 0x229   :  { %v153_v4 = vld [vmem:[#allocation2 + $0x380] sm:$0xff] }
 0x22a   :  { %v438_v6 = vmax.f32 %v437_v5, 0.0  ;;  %v281_v5 = vld [vmem:[#allocation2 + $0x780] sm:$0xff] }
 0x22c   :  { %v439_v7 = vadd.f32 1e-05, %v438_v6  ;;  %v145_v6 = vld [vmem:[#allocation2 + $0x340] sm:$0xff] }
 0x22e   :  { %958 = vrsqrt.f32 %v439_v7  ;;  %vm446_vm6 = vweird.f32 %v439_v7 }
 0x234   :  { %v959_v8 = vpop.eup %958 }
 0x235   :  { %v441_v9 = vmul.f32 %v959_v8, %v439_v7  ;;  %vm447_vm5 = vweird.f32 %v959_v8  ;;  %v273_v7 = vld [vmem:[#allocation2 + $0x740] sm:$0xff] }
 0x236   :  { %vm448_vm7 = vmor %vm446_vm6, %vm447_vm5 }
 0x237   :  { %v442_v10 = vmul.f32 %v959_v8, %v441_v9  ;;  %v265_v9 = vld [vmem:[#allocation2 + $0x700] sm:$0xff] }
 0x239   :  { %v443_v11 = vmul.f32 0.5, %v442_v10  ;;  %v257_v10 = vld [vmem:[#allocation2 + $0x6c0] sm:$0xff] }
 0x23b   :  { %v444_v12 = vsub.f32 1.5, %v443_v11  ;;  %v249_v11 = vld [vmem:[#allocation2 + $0x680] sm:$0xff] }
 0x23d   :  { %v445_v13 = vmul.f32 %v959_v8, %v444_v12  ;;  %v113_v12 = vld [vmem:[#allocation2 + $0x240] sm:$0xff] }
 0x23f   :  { %v449_v14 = vsel %vm448_vm7, %v959_v8, %v445_v13  ;;  %v137_v8 = vld [vmem:[#allocation2 + $0x300] sm:$0xff] }
 0x240   :  { %v450_v15 = vmul.f32 %v449_v14, %v1051_v28  ;;  %v241_v13 = vld [vmem:[#allocation2 + $0x640] sm:$0xff] }
 0x241   :  { %v105_v14 = vld [vmem:[#allocation2 + $0x200] sm:$0xff] }
 0x242   :  { %455 = vperm.xlu1 %953, %v450_v15   ;;  %v451_v16 = vmul.f32 %v450_v15, %v426_v63  ;;  %v233_v15 = vld [vmem:[#allocation2 + $0x600] sm:$0xff] }
 0x244   :  { %v452_v17 = vsub.f32 %v1057_v33, %v451_v16  ;;  %v97_v16 = vld [vmem:[#allocation2 + $0x1c0] sm:$0xff] }
 0x246   :  { %462 = vperm.xlu0 %955, %v452_v17   ;;  %v225_v17 = vld [vmem:[#allocation2 + $0x5c0] sm:$0xff] }
 0x2b4   :  { %v456_v18 = vpop.permute.xlu1 %455 }
 0x2b5   :  { %v458_v19 = vmul.f32 %v456_v18, %v388_v48  ;;  %v459_v20 = vmul.f32 %v456_v18, %v408_v49  ;;  %v89_v18 = vld [vmem:[#allocation2 + $0x180] sm:$0xff] }
 0x2b8   :  { %v463_v21 = vpop.permute.xlu0 %462 }
 0x2b9   :  { %v465_v22 = vadd.f32 %v463_v21, %v458_v19  ;;  %v466_v23 = vadd.f32 %v463_v21, %v459_v20  ;;  %v217_v19 = vld [vmem:[#allocation2 + $0x580] sm:$0xff] }
 0x2ba   :  { %v81_v20 = vld [vmem:[#allocation2 + $0x140] sm:$0xff] }
 0x2bb   :  { %v467_v24 = vmax.f32 %v465_v22, 0.0  ;;  %v468_v25 = vmax.f32 %v466_v23, 0.0  ;;  %v209_v21 = vld [vmem:[#allocation2 + $0x540] sm:$0xff] }
 0x2bc   :  { %v73_v22 = vld [vmem:[#allocation2 + $0x100] sm:$0xff] }
 0x2bd   :  { %484 = vmatpush.msra.mxu2 %v467_v24  ;;  %504 = vmatpush.msra.mxu3 %v468_v25  ;;  %v201_v23 = vld [vmem:[#allocation2 + $0x500] sm:$0xff] }
 0x2be   :  { %945 = vmatmul.msk.f32.vlgmr.msra.gmra.mxu2 %vm366_vm4, %v1068_v44  ;;  %946 = vmatmul.msk.f32.vlgmr.msra.gmra.mxu3 %vm366_vm4, %v1068_v44  ;;  %v65_v25 = vld [vmem:[#allocation2 + $0xc0] sm:$0xff] }
 0x2bf   :  { %610 = vmatpush.msrb.mxu2 %v161_v2  ;;  %630 = vmatpush.msrb.mxu3 %v289_v3  ;;  %v259_v2 = vld [vmem:[#allocation2 + $0x6d0] sm:$0xff]  ;;  %v114_v3 = vld [vmem:[#allocation2 + $0x248] sm:$0xff] }
 0x2c1   :  { %611 = vmatpush.msrb.mxu2 %v153_v4  ;;  %631 = vmatpush.msrb.mxu3 %v281_v5  ;;  %v242_v4 = vld [vmem:[#allocation2 + $0x648] sm:$0xff]  ;;  %v123_v5 = vld [vmem:[#allocation2 + $0x290] sm:$0xff] }
 0x2c3   :  { %612 = vmatpush.msrb.mxu2 %v145_v6  ;;  %632 = vmatpush.msrb.mxu3 %v273_v7  ;;  %v251_v6 = vld [vmem:[#allocation2 + $0x690] sm:$0xff]  ;;  %v106_v7 = vld [vmem:[#allocation2 + $0x208] sm:$0xff] }
 0x2c5   :  { %613 = vmatpush.msrb.mxu2 %v137_v8  ;;  %633 = vmatpush.msrb.mxu3 %v265_v9  ;;  %v234_v8 = vld [vmem:[#allocation2 + $0x608] sm:$0xff]  ;;  %v115_v9 = vld [vmem:[#allocation2 + $0x250] sm:$0xff] }
 0x2c7   :  { %634 = vmatpush.msrb.mxu3 %v257_v10  ;;  %v98_v10 = vld [vmem:[#allocation2 + $0x1c8] sm:$0xff] }
 0x2c9   :  { %635 = vmatpush.msrb.mxu3 %v249_v11  ;;  %v107_v11 = vld [vmem:[#allocation2 + $0x210] sm:$0xff] }
 0x2cb   :  { %636 = vmatpush.msrb.mxu3 %v241_v13  ;;  %v90_v13 = vld [vmem:[#allocation2 + $0x188] sm:$0xff] }
 0x2cd   :  { %637 = vmatpush.msrb.mxu3 %v233_v15  ;;  %v99_v15 = vld [vmem:[#allocation2 + $0x1d0] sm:$0xff] }
 0x2cf   :  { %638 = vmatpush.msrb.mxu3 %v225_v17  ;;  %v82_v17 = vld [vmem:[#allocation2 + $0x148] sm:$0xff] }
 0x2d1   :  { %639 = vmatpush.msrb.mxu3 %v217_v19  ;;  %v91_v19 = vld [vmem:[#allocation2 + $0x190] sm:$0xff] }
 0x2d3   :  { %640 = vmatpush.msrb.mxu3 %v209_v21  ;;  %v74_v21 = vld [vmem:[#allocation2 + $0x108] sm:$0xff] }
 0x2d5   :  { %641 = vmatpush.msrb.mxu3 %v201_v23  ;;  %v83_v23 = vld [vmem:[#allocation2 + $0x150] sm:$0xff] }
 0x341   :  { %v486_v26 = vpop.f32.mrf.mxu2  ;;  %v506_v27 = vpop.f32.mrf.mxu3 }
 0x342   :  { %v1087_v29 = vadd.f32 %v486_v26, %v1074_v45  ;;  %v1090_v30 = vadd.f32 %v506_v27, %v1074_v45  ;;  %v193_v26 = vld [vmem:[#allocation2 + $0x4c0] sm:$0xff] }
 0x343   :  { %642 = vmatpush.msrb.mxu3 %v193_v26  ;;  %v194_v26 = vld [vmem:[#allocation2 + $0x4c8] sm:$0xff] }
 0x344   :  { %v509_v31 = vadd.f32 %v1090_v30, %v1087_v29  ;;  %v512_v32 = vmul.f32 %v1087_v29, %v1087_v29  ;;  %v513_v34 = vmul.f32 %v1090_v30, %v1090_v30 }
 0x346   :  { %510 = vadd.xlane.f32.xlu1 %v509_v31  ;;  %v514_v35 = vadd.f32 %v513_v34, %v512_v32  ;;  %v57_v32 = vld [vmem:[#allocation2 + $0x80] sm:$0xff] }
 0x347   :  { %v185_v34 = vld [vmem:[#allocation2 + $0x480] sm:$0xff] }
 0x348   :  { %515 = vadd.xlane.f32.xlu2 %v514_v35  ;;  %643 = vmatpush.msrb.mxu3 %v185_v34  ;;  %v186_v34 = vld [vmem:[#allocation2 + $0x488] sm:$0xff] }
 0x3b9   :  { %v511_v36 = vpop.xlane.xlu1 %510 }
 0x3ba   :  { %v518_v37 = vrot.slane %v511_v36, 4 }
 0x3bb   :  { %v516_v38 = vpop.xlane.xlu2 %515 }
 0x3bc   :  { %v520_v39 = vadd.f32 %v518_v37, %v511_v36  ;;  %v527_v40 = vrot.slane %v516_v38, 4 }
 0x3be   :  { %v522_v41 = vrot.slane %v520_v39, 4  ;;  %v529_v42 = vadd.f32 %v527_v40, %v516_v38  ;;  %v49_v38 = vld [vmem:[#allocation2 + $0x40] sm:$0xff] }
 0x3c0   :  { %v524_v43 = vsel %vm316_vm0, %v520_v39, %v522_v41  ;;  %v531_v46 = vrot.slane %v529_v42, 4  ;;  %v177_v39 = vld [vmem:[#allocation2 + $0x440] sm:$0xff] }
 0x3c1   :  { %v525_v47 = vmul.f32 0.001953125, %v524_v43  ;;  %644 = vmatpush.msrb.mxu3 %v177_v39  ;;  %v290_v43 = vld [vmem:[#allocation2 + $0x7c8] sm:$0xff] }
 0x3c2   :  { %v533_v48 = vsel %vm316_vm0, %v529_v42, %v531_v46  ;;  %v162_v42 = vld [vmem:[#allocation2 + $0x3c8] sm:$0xff] }
 0x3c3   :  { %v535_v49 = vmul.f32 %v525_v47, %v525_v47  ;;  %v534_v50 = vmul.f32 0.001953125, %v533_v48  ;;  %v154_v46 = vld [vmem:[#allocation2 + $0x388] sm:$0xff]  ;;  %v163_v48 = vld [vmem:[#allocation2 + $0x3d0] sm:$0xff] }
 0x3c4   :  { %v42_v39 = vld [vmem:[#allocation2 + $0x8] sm:$0xff] }
 0x3c5   :  { %v536_v51 = vsub.f32 %v534_v50, %v535_v49  ;;  %v291_v49 = vld [vmem:[#allocation2 + $0x7d0] sm:$0xff]  ;;  %v146_v50 = vld [vmem:[#allocation2 + $0x348] sm:$0xff] }
 0x3c7   :  { %v537_v52 = vmax.f32 %v536_v51, 0.0  ;;  %v274_v51 = vld [vmem:[#allocation2 + $0x748] sm:$0xff] }
 0x3c9   :  { %v538_v53 = vadd.f32 1e-05, %v537_v52  ;;  %v155_v52 = vld [vmem:[#allocation2 + $0x390] sm:$0xff] }
 0x3cb   :  { %960 = vrsqrt.f32 %v538_v53  ;;  %vm545_vm9 = vweird.f32 %v538_v53 }
 0x3d1   :  { %v961_v54 = vpop.eup %960 }
 0x3d2   :  { %v540_v55 = vmul.f32 %v961_v54, %v538_v53  ;;  %vm546_vm8 = vweird.f32 %v961_v54  ;;  %v283_v53 = vld [vmem:[#allocation2 + $0x790] sm:$0xff] }
 0x3d3   :  { %vm547_vm10 = vmor %vm545_vm9, %vm546_vm8 }
 0x3d4   :  { %v541_v56 = vmul.f32 %v961_v54, %v540_v55  ;;  %v266_v55 = vld [vmem:[#allocation2 + $0x708] sm:$0xff] }
 0x3d6   :  { %v542_v57 = vmul.f32 0.5, %v541_v56  ;;  %v275_v56 = vld [vmem:[#allocation2 + $0x750] sm:$0xff] }
 0x3d8   :  { %v543_v58 = vsub.f32 1.5, %v542_v57  ;;  %v130_v57 = vld [vmem:[#allocation2 + $0x2c8] sm:$0xff] }
 0x3da   :  { %v544_v59 = vmul.f32 %v961_v54, %v543_v58  ;;  %v258_v58 = vld [vmem:[#allocation2 + $0x6c8] sm:$0xff] }
 0x3dc   :  { %v548_v60 = vsel %vm547_vm10, %v961_v54, %v544_v59  ;;  %v138_v54 = vld [vmem:[#allocation2 + $0x308] sm:$0xff]  ;;  %v139_v59 = vld [vmem:[#allocation2 + $0x310] sm:$0xff] }
 0x3dd   :  { %v549_v61 = vmul.f32 %v548_v60, %v1051_v28  ;;  %v129_v28 = vld [vmem:[#allocation2 + $0x2c0] sm:$0xff]  ;;  %v267_v60 = vld [vmem:[#allocation2 + $0x710] sm:$0xff] }
 0x3de   :  { %614 = vmatpush.msrb.mxu2 %v129_v28  ;;  %v243_v28 = vld [vmem:[#allocation2 + $0x650] sm:$0xff] }
 0x3df   :  { %554 = vperm.xlu2 %954, %v549_v61   ;;  %v550_v62 = vmul.f32 %v549_v61, %v525_v47  ;;  %v282_v47 = vld [vmem:[#allocation2 + $0x788] sm:$0xff] }
 0x3e0   :  { %v122_v61 = vld [vmem:[#allocation2 + $0x288] sm:$0xff] }
 0x3e1   :  { %v551_v63 = vsub.f32 %v1057_v33, %v550_v62  ;;  %v121_v33 = vld [vmem:[#allocation2 + $0x280] sm:$0xff]  ;;  %v250_v62 = vld [vmem:[#allocation2 + $0x688] sm:$0xff] }
 0x3e2   :  { %615 = vmatpush.msrb.mxu2 %v121_v33  ;;  %v226_v33 = vld [vmem:[#allocation2 + $0x5c8] sm:$0xff] }
 0x3e3   :  { %561 = vperm.xlu0 %955, %v551_v63   ;;  %v131_v63 = vld [vmem:[#allocation2 + $0x2d0] sm:$0xff] }
 0x3e4   :  { %616 = vmatpush.msrb.mxu2 %v113_v12  ;;  %v235_v12 = vld [vmem:[#allocation2 + $0x610] sm:$0xff] }
 0x3e6   :  { %617 = vmatpush.msrb.mxu2 %v105_v14  ;;  %v218_v14 = vld [vmem:[#allocation2 + $0x588] sm:$0xff] }
 0x3e8   :  { %618 = vmatpush.msrb.mxu2 %v97_v16  ;;  %v227_v16 = vld [vmem:[#allocation2 + $0x5d0] sm:$0xff] }
 0x3ea   :  { %619 = vmatpush.msrb.mxu2 %v89_v18  ;;  %v210_v18 = vld [vmem:[#allocation2 + $0x548] sm:$0xff] }
 0x3ec   :  { %620 = vmatpush.msrb.mxu2 %v81_v20  ;;  %v219_v20 = vld [vmem:[#allocation2 + $0x590] sm:$0xff] }
 0x3ee   :  { %621 = vmatpush.msrb.mxu2 %v73_v22  ;;  %v202_v22 = vld [vmem:[#allocation2 + $0x508] sm:$0xff] }
 0x3f0   :  { %622 = vmatpush.msrb.mxu2 %v65_v25  ;;  %v66_v25 = vld [vmem:[#allocation2 + $0xc8] sm:$0xff] }
 0x3f2   :  { %623 = vmatpush.msrb.mxu2 %v57_v32  ;;  %v58_v32 = vld [vmem:[#allocation2 + $0x88] sm:$0xff] }
 0x3f4   :  { %624 = vmatpush.msrb.mxu2 %v49_v38  ;;  %v178_v38 = vld [vmem:[#allocation2 + $0x448] sm:$0xff] }
 0x439   :  { %v555_v24 = vpop.permute.xlu2 %554 }
 0x43a   :  { %v557_v27 = vmul.f32 %v555_v24, %v1087_v29  ;;  %v558_v31 = vmul.f32 %v555_v24, %v1090_v30  ;;  %v41_v29 = vld [vmem:[#allocation2] sm:$0xff]  ;;  %v211_v24 = vld [vmem:[#allocation2 + $0x550] sm:$0xff] }
 0x43b   :  { %v169_v30 = vld [vmem:[#allocation2 + $0x400] sm:$0xff]  ;;  %625 = vmatpush.msrb.mxu2 %v41_v29  ;;  %v284_v29 = vld [vmem:[#allocation2 + $0x798] sm:$0xff] }
 0x43c   :  { %645 = vmatpush.msrb.mxu3 %v169_v30  ;;  %v148_v30 = vld [vmem:[#allocation2 + $0x358] sm:$0xff] }
 0x43d   :  { %690 = vmatpush.msra.mxu2 %v163_v48  ;;  %v268_v48 = vld [vmem:[#allocation2 + $0x718] sm:$0xff] }
 0x43e   :  { %710 = vmatpush.msra.mxu3 %v291_v49  ;;  %v132_v49 = vld [vmem:[#allocation2 + $0x2d8] sm:$0xff] }
 0x43f   :  { %691 = vmatpush.msra.mxu2 %v155_v52  ;;  %v252_v52 = vld [vmem:[#allocation2 + $0x698] sm:$0xff] }
 0x440   :  { %711 = vmatpush.msra.mxu3 %v283_v53  ;;  %v116_v53 = vld [vmem:[#allocation2 + $0x258] sm:$0xff] }
 0x442   :  { %712 = vmatpush.msra.mxu3 %v275_v56  ;;  %v100_v56 = vld [vmem:[#allocation2 + $0x1d8] sm:$0xff] }
 0x444   :  { %713 = vmatpush.msra.mxu3 %v267_v60  ;;  %v84_v60 = vld [vmem:[#allocation2 + $0x158] sm:$0xff] }
 0x446   :  { %714 = vmatpush.msra.mxu3 %v259_v2  ;;  %v68_v2 = vld [vmem:[#allocation2 + $0xd8] sm:$0xff] }
 0x448   :  { %715 = vmatpush.msra.mxu3 %v251_v6  ;;  %v60_v6 = vld [vmem:[#allocation2 + $0x98] sm:$0xff] }
 0x44a   :  { %716 = vmatpush.msra.mxu3 %v243_v28  ;;  %v52_v28 = vld [vmem:[#allocation2 + $0x58] sm:$0xff] }
 0x44c   :  { %717 = vmatpush.msra.mxu3 %v235_v12  ;;  %v44_v12 = vld [vmem:[#allocation2 + $0x18] sm:$0xff] }
 0x44e   :  { %718 = vmatpush.msra.mxu3 %v227_v16 }
 0x450   :  { %719 = vmatpush.msra.mxu3 %v219_v20  ;;  %v165_v20 = vld [vmem:[#allocation2 + $0x3e0] sm:$0xff] }
 0x452   :  { %720 = vmatpush.msra.mxu3 %v211_v24  ;;  %v157_v24 = vld [vmem:[#allocation2 + $0x3a0] sm:$0xff] }
 0x455   :  { %v562_v35 = vpop.permute.xlu0 %561 }
 0x456   :  { %v564_v36 = vadd.f32 %v562_v35, %v557_v27  ;;  %v565_v37 = vadd.f32 %v562_v35, %v558_v31  ;;  %v75_v27 = vld [vmem:[#allocation2 + $0x110] sm:$0xff] }
 0x457   :  { %v203_v31 = vld [vmem:[#allocation2 + $0x510] sm:$0xff] }
 0x458   :  { %v566_v40 = vmax.f32 %v564_v36, 0.0  ;;  %v567_v41 = vmax.f32 %v565_v37, 0.0  ;;  %v67_v35 = vld [vmem:[#allocation2 + $0xd0] sm:$0xff]  ;;  %v50_v37 = vld [vmem:[#allocation2 + $0x48] sm:$0xff]  ;;  %721 = vmatpush.msra.mxu3 %v203_v31 }
 0x459   :  { %v195_v36 = vld [vmem:[#allocation2 + $0x4d0] sm:$0xff]  ;;  %v278_v31 = vld [vmem:[#allocation2 + $0x768] sm:$0xff] }
 0x45a   :  { %583 = vmatpush.msrb.mxu0 %v566_v40  ;;  %603 = vmatpush.msrb.mxu1 %v567_v41  ;;  %v170_v40 = vld [vmem:[#allocation2 + $0x408] sm:$0xff]  ;;  %v164_v41 = vld [vmem:[#allocation2 + $0x3d8] sm:$0xff] }
 0x45b   :  { %947 = vmatmul.msk.f32.vlgmr.msrb.gmra.mxu0 %vm366_vm4, %v1068_v44  ;;  %948 = vmatmul.msk.f32.vlgmr.msrb.gmra.mxu1 %vm366_vm4, %v1068_v44  ;;  %v147_v44 = vld [vmem:[#allocation2 + $0x350] sm:$0xff] }
 0x45c   :  { %650 = vmatpush.msra.mxu0 %v162_v42  ;;  %670 = vmatpush.msra.mxu1 %v290_v43  ;;  %v292_v42 = vld [vmem:[#allocation2 + $0x7d8] sm:$0xff] }
 0x45d   :  { %692 = vmatpush.msra.mxu2 %v147_v44  ;;  %722 = vmatpush.msra.mxu3 %v195_v36  ;;  %v156_v43 = vld [vmem:[#allocation2 + $0x398] sm:$0xff]  ;;  %v270_v36 = vld [vmem:[#allocation2 + $0x728] sm:$0xff] }
 0x45e   :  { %651 = vmatpush.msra.mxu0 %v154_v46  ;;  %671 = vmatpush.msra.mxu1 %v282_v47  ;;  %v276_v46 = vld [vmem:[#allocation2 + $0x758] sm:$0xff] }
 0x45f   :  { %693 = vmatpush.msra.mxu2 %v139_v59  ;;  %v140_v47 = vld [vmem:[#allocation2 + $0x318] sm:$0xff] }
 0x460   :  { %652 = vmatpush.msra.mxu0 %v146_v50  ;;  %672 = vmatpush.msra.mxu1 %v274_v51  ;;  %v260_v50 = vld [vmem:[#allocation2 + $0x6d8] sm:$0xff] }
 0x461   :  { %694 = vmatpush.msra.mxu2 %v131_v63  ;;  %v124_v51 = vld [vmem:[#allocation2 + $0x298] sm:$0xff] }
 0x462   :  { %653 = vmatpush.msra.mxu0 %v138_v54  ;;  %673 = vmatpush.msra.mxu1 %v266_v55  ;;  %v244_v54 = vld [vmem:[#allocation2 + $0x658] sm:$0xff] }
 0x463   :  { %695 = vmatpush.msra.mxu2 %v123_v5  ;;  %v108_v55 = vld [vmem:[#allocation2 + $0x218] sm:$0xff]  ;;  %v187_v5 = vld [vmem:[#allocation2 + $0x490] sm:$0xff] }
 0x464   :  { %654 = vmatpush.msra.mxu0 %v130_v57  ;;  %674 = vmatpush.msra.mxu1 %v258_v58  ;;  %v236_v44 = vld [vmem:[#allocation2 + $0x618] sm:$0xff] }
 0x465   :  { %696 = vmatpush.msra.mxu2 %v115_v9  ;;  %v228_v57 = vld [vmem:[#allocation2 + $0x5d8] sm:$0xff]  ;;  %723 = vmatpush.msra.mxu3 %v187_v5  ;;  %v179_v9 = vld [vmem:[#allocation2 + $0x450] sm:$0xff]  ;;  %v206_v5 = vld [vmem:[#allocation2 + $0x528] sm:$0xff] }
 0x466   :  { %655 = vmatpush.msra.mxu0 %v122_v61  ;;  %675 = vmatpush.msra.mxu1 %v250_v62  ;;  %v92_v58 = vld [vmem:[#allocation2 + $0x198] sm:$0xff] }
 0x467   :  { %697 = vmatpush.msra.mxu2 %v107_v11  ;;  %v220_v59 = vld [vmem:[#allocation2 + $0x598] sm:$0xff]  ;;  %724 = vmatpush.msra.mxu3 %v179_v9  ;;  %v171_v11 = vld [vmem:[#allocation2 + $0x410] sm:$0xff]  ;;  %v198_v9 = vld [vmem:[#allocation2 + $0x4e8] sm:$0xff] }
 0x468   :  { %656 = vmatpush.msra.mxu0 %v114_v3  ;;  %676 = vmatpush.msra.mxu1 %v242_v4  ;;  %v212_v61 = vld [vmem:[#allocation2 + $0x558] sm:$0xff]  ;;  %v59_v4 = vld [vmem:[#allocation2 + $0x90] sm:$0xff] }
 0x469   :  { %698 = vmatpush.msra.mxu2 %v99_v15  ;;  %v76_v62 = vld [vmem:[#allocation2 + $0x118] sm:$0xff]  ;;  %725 = vmatpush.msra.mxu3 %v171_v11  ;;  %v190_v11 = vld [vmem:[#allocation2 + $0x4a8] sm:$0xff] }
 0x46a   :  { %657 = vmatpush.msra.mxu0 %v106_v7  ;;  %677 = vmatpush.msra.mxu1 %v234_v8  ;;  %v204_v63 = vld [vmem:[#allocation2 + $0x518] sm:$0xff]  ;;  %v51_v8 = vld [vmem:[#allocation2 + $0x50] sm:$0xff] }
 0x46b   :  { %699 = vmatpush.msra.mxu2 %v91_v19  ;;  %v196_v3 = vld [vmem:[#allocation2 + $0x4d8] sm:$0xff] }
 0x46c   :  { %658 = vmatpush.msra.mxu0 %v98_v10  ;;  %678 = vmatpush.msra.mxu1 %v226_v33  ;;  %v188_v7 = vld [vmem:[#allocation2 + $0x498] sm:$0xff]  ;;  %v43_v33 = vld [vmem:[#allocation2 + $0x10] sm:$0xff] }
 0x46d   :  { %700 = vmatpush.msra.mxu2 %v83_v23  ;;  %v180_v10 = vld [vmem:[#allocation2 + $0x458] sm:$0xff]  ;;  %v294_v23 = vld [vmem:[#allocation2 + $0x7e8] sm:$0xff] }
 0x46e   :  { %659 = vmatpush.msra.mxu0 %v90_v13  ;;  %679 = vmatpush.msra.mxu1 %v218_v14  ;;  %v172_v13 = vld [vmem:[#allocation2 + $0x418] sm:$0xff] }
 0x46f   :  { %701 = vmatpush.msra.mxu2 %v75_v27  ;;  %v150_v27 = vld [vmem:[#allocation2 + $0x368] sm:$0xff] }
 0x470   :  { %660 = vmatpush.msra.mxu0 %v82_v17  ;;  %680 = vmatpush.msra.mxu1 %v210_v18 }
 0x471   :  { %702 = vmatpush.msra.mxu2 %v67_v35  ;;  %v142_v35 = vld [vmem:[#allocation2 + $0x328] sm:$0xff] }
 0x472   :  { %661 = vmatpush.msra.mxu0 %v74_v21  ;;  %681 = vmatpush.msra.mxu1 %v202_v22  ;;  %v293_v21 = vld [vmem:[#allocation2 + $0x7e0] sm:$0xff]  ;;  %v166_v22 = vld [vmem:[#allocation2 + $0x3e8] sm:$0xff] }
 0x473   :  { %703 = vmatpush.msra.mxu2 %v59_v4  ;;  %v78_v4 = vld [vmem:[#allocation2 + $0x128] sm:$0xff] }
 0x474   :  { %662 = vmatpush.msra.mxu0 %v66_v25  ;;  %682 = vmatpush.msra.mxu1 %v194_v26  ;;  %v286_v25 = vld [vmem:[#allocation2 + $0x7a8] sm:$0xff]  ;;  %v277_v26 = vld [vmem:[#allocation2 + $0x760] sm:$0xff] }
 0x475   :  { %704 = vmatpush.msra.mxu2 %v51_v8  ;;  %v70_v8 = vld [vmem:[#allocation2 + $0xe8] sm:$0xff] }
 0x476   :  { %663 = vmatpush.msra.mxu0 %v58_v32  ;;  %683 = vmatpush.msra.mxu1 %v186_v34  ;;  %v141_v32 = vld [vmem:[#allocation2 + $0x320] sm:$0xff] }
 0x477   :  { %705 = vmatpush.msra.mxu2 %v43_v33  ;;  %v269_v34 = vld [vmem:[#allocation2 + $0x720] sm:$0xff]  ;;  %v62_v33 = vld [vmem:[#allocation2 + $0xa8] sm:$0xff] }
 0x478   :  { %664 = vmatpush.msra.mxu0 %v50_v37  ;;  %684 = vmatpush.msra.mxu1 %v178_v38  ;;  %v133_v37 = vld [vmem:[#allocation2 + $0x2e0] sm:$0xff] }
 0x479   :  { %v261_v38 = vld [vmem:[#allocation2 + $0x6e0] sm:$0xff] }
 0x47a   :  { %665 = vmatpush.msra.mxu0 %v42_v39  ;;  %685 = vmatpush.msra.mxu1 %v170_v40  ;;  %v134_v39 = vld [vmem:[#allocation2 + $0x2e8] sm:$0xff] }
 0x47b   :  { %v262_v40 = vld [vmem:[#allocation2 + $0x6e8] sm:$0xff] }
 0x47c   :  { %730 = vmatpush.msrb.mxu0 %v164_v41  ;;  %750 = vmatpush.msrb.mxu1 %v292_v42  ;;  %v125_v41 = vld [vmem:[#allocation2 + $0x2a0] sm:$0xff] }
 0x47d   :  { %v253_v42 = vld [vmem:[#allocation2 + $0x6a0] sm:$0xff] }
 0x47e   :  { %731 = vmatpush.msrb.mxu0 %v156_v43  ;;  %751 = vmatpush.msrb.mxu1 %v284_v29  ;;  %v126_v43 = vld [vmem:[#allocation2 + $0x2a8] sm:$0xff] }
 0x47f   :  { %v254_v29 = vld [vmem:[#allocation2 + $0x6a8] sm:$0xff] }
 0x480   :  { %732 = vmatpush.msrb.mxu0 %v148_v30  ;;  %752 = vmatpush.msrb.mxu1 %v276_v46  ;;  %v117_v30 = vld [vmem:[#allocation2 + $0x260] sm:$0xff] }
 0x481   :  { %v245_v46 = vld [vmem:[#allocation2 + $0x660] sm:$0xff] }
 0x482   :  { %733 = vmatpush.msrb.mxu0 %v140_v47  ;;  %753 = vmatpush.msrb.mxu1 %v268_v48  ;;  %v118_v47 = vld [vmem:[#allocation2 + $0x268] sm:$0xff] }
 0x483   :  { %v246_v48 = vld [vmem:[#allocation2 + $0x668] sm:$0xff] }
 0x484   :  { %734 = vmatpush.msrb.mxu0 %v132_v49  ;;  %754 = vmatpush.msrb.mxu1 %v260_v50  ;;  %v109_v49 = vld [vmem:[#allocation2 + $0x220] sm:$0xff] }
 0x485   :  { %v237_v50 = vld [vmem:[#allocation2 + $0x620] sm:$0xff] }
 0x486   :  { %735 = vmatpush.msrb.mxu0 %v124_v51  ;;  %755 = vmatpush.msrb.mxu1 %v252_v52  ;;  %v110_v51 = vld [vmem:[#allocation2 + $0x228] sm:$0xff] }
 0x487   :  { %v238_v52 = vld [vmem:[#allocation2 + $0x628] sm:$0xff] }
 0x488   :  { %736 = vmatpush.msrb.mxu0 %v116_v53  ;;  %756 = vmatpush.msrb.mxu1 %v244_v54  ;;  %v101_v53 = vld [vmem:[#allocation2 + $0x1e0] sm:$0xff] }
 0x489   :  { %v229_v54 = vld [vmem:[#allocation2 + $0x5e0] sm:$0xff] }
 0x48a   :  { %737 = vmatpush.msrb.mxu0 %v108_v55  ;;  %757 = vmatpush.msrb.mxu1 %v236_v44  ;;  %v102_v55 = vld [vmem:[#allocation2 + $0x1e8] sm:$0xff] }
 0x48b   :  { %v230_v44 = vld [vmem:[#allocation2 + $0x5e8] sm:$0xff] }
 0x48c   :  { %738 = vmatpush.msrb.mxu0 %v100_v56  ;;  %758 = vmatpush.msrb.mxu1 %v228_v57  ;;  %v93_v56 = vld [vmem:[#allocation2 + $0x1a0] sm:$0xff] }
 0x48d   :  { %v221_v57 = vld [vmem:[#allocation2 + $0x5a0] sm:$0xff] }
 0x48e   :  { %739 = vmatpush.msrb.mxu0 %v92_v58  ;;  %759 = vmatpush.msrb.mxu1 %v220_v59  ;;  %v94_v58 = vld [vmem:[#allocation2 + $0x1a8] sm:$0xff] }
 0x48f   :  { %v222_v59 = vld [vmem:[#allocation2 + $0x5a8] sm:$0xff] }
 0x490   :  { %740 = vmatpush.msrb.mxu0 %v84_v60  ;;  %760 = vmatpush.msrb.mxu1 %v212_v61  ;;  %v85_v60 = vld [vmem:[#allocation2 + $0x160] sm:$0xff] }
 0x491   :  { %v213_v61 = vld [vmem:[#allocation2 + $0x560] sm:$0xff] }
 0x492   :  { %741 = vmatpush.msrb.mxu0 %v76_v62  ;;  %761 = vmatpush.msrb.mxu1 %v204_v63  ;;  %v86_v62 = vld [vmem:[#allocation2 + $0x168] sm:$0xff] }
 0x493   :  { %v214_v63 = vld [vmem:[#allocation2 + $0x568] sm:$0xff] }
 0x494   :  { %742 = vmatpush.msrb.mxu0 %v68_v2  ;;  %762 = vmatpush.msrb.mxu1 %v196_v3  ;;  %v77_v2 = vld [vmem:[#allocation2 + $0x120] sm:$0xff] }
 0x495   :  { %v205_v3 = vld [vmem:[#allocation2 + $0x520] sm:$0xff] }
 0x496   :  { %743 = vmatpush.msrb.mxu0 %v60_v6  ;;  %763 = vmatpush.msrb.mxu1 %v188_v7  ;;  %v69_v6 = vld [vmem:[#allocation2 + $0xe0] sm:$0xff] }
 0x497   :  { %v197_v7 = vld [vmem:[#allocation2 + $0x4e0] sm:$0xff] }
 0x498   :  { %744 = vmatpush.msrb.mxu0 %v52_v28  ;;  %764 = vmatpush.msrb.mxu1 %v180_v10  ;;  %v61_v28 = vld [vmem:[#allocation2 + $0xa0] sm:$0xff] }
 0x499   :  { %v189_v10 = vld [vmem:[#allocation2 + $0x4a0] sm:$0xff] }
 0x49a   :  { %745 = vmatpush.msrb.mxu0 %v44_v12  ;;  %765 = vmatpush.msrb.mxu1 %v172_v13  ;;  %v53_v12 = vld [vmem:[#allocation2 + $0x60] sm:$0xff] }
 0x49b   :  { %v181_v13 = vld [vmem:[#allocation2 + $0x460] sm:$0xff] }
 0x4d8   :  { %v585_v14 = vpop.f32.mrf.mxu0  ;;  %v605_v15 = vpop.f32.mrf.mxu1 }
 0x4d9   :  { %v586_v16 = vadd.f32 %v585_v14, %v1074_v45  ;;  %v606_v17 = vadd.f32 %v605_v15, %v1074_v45  ;;  %v285_v45 = vld [vmem:[#allocation2 + $0x7a0] sm:$0xff]  ;;  %v54_v14 = vld [vmem:[#allocation2 + $0x68] sm:$0xff] }
 0x4da   :  { %v182_v15 = vld [vmem:[#allocation2 + $0x468] sm:$0xff] }
 0x4db   :  { %v1111_v18 = vadd.f32 %v586_v16, %v1033_v0  ;;  %v1114_v19 = vadd.f32 %v606_v17, %v1038_v1  ;;  %v158_v0 = vld [vmem:[#allocation2 + $0x3a8] sm:$0xff]  ;;  %v149_v1 = vld [vmem:[#allocation2 + $0x360] sm:$0xff] }
 0x4dc   :  { %v45_v16 = vld [vmem:[#allocation2 + $0x20] sm:$0xff] }
 0x4dd   :  { %626 = vmatmul.f32.vlgmr.msrb.gmra.mxu2 %v1111_v18  ;;  %646 = vmatmul.f32.vlgmr.msrb.gmra.mxu3 %v1114_v19  ;;  %v173_v17 = vld [vmem:[#allocation2 + $0x420] sm:$0xff] }
 0x4de   :  { %666 = vmatmul.f32.vlgmr.msra.gmra.mxu0 %v1111_v18  ;;  %686 = vmatmul.f32.vlgmr.msra.gmra.mxu1 %v1114_v19 }
 0x4df   :  { %770 = vmatpush.msrb.mxu2 %v165_v20  ;;  %790 = vmatpush.msrb.mxu3 %v293_v21  ;;  %v46_v20 = vld [vmem:[#allocation2 + $0x28] sm:$0xff] }
 0x4e0   :  { %810 = vmatpush.msra.mxu0 %v166_v22  ;;  %830 = vmatpush.msra.mxu1 %v294_v23  ;;  %v174_v21 = vld [vmem:[#allocation2 + $0x428] sm:$0xff]  ;;  %v167_v22 = vld [vmem:[#allocation2 + $0x3f0] sm:$0xff] }
 0x4e1   :  { %771 = vmatpush.msrb.mxu2 %v157_v24  ;;  %791 = vmatpush.msrb.mxu3 %v285_v45  ;;  %v295_v23 = vld [vmem:[#allocation2 + $0x7f0] sm:$0xff]  ;;  %v168_v24 = vld [vmem:[#allocation2 + $0x3f8] sm:$0xff] }
 0x4e2   :  { %811 = vmatpush.msra.mxu0 %v158_v0  ;;  %831 = vmatpush.msra.mxu1 %v286_v25  ;;  %v296_v45 = vld [vmem:[#allocation2 + $0x7f8] sm:$0xff]  ;;  %v159_v0 = vld [vmem:[#allocation2 + $0x3b0] sm:$0xff] }
 0x4e3   :  { %772 = vmatpush.msrb.mxu2 %v149_v1  ;;  %792 = vmatpush.msrb.mxu3 %v277_v26  ;;  %v287_v25 = vld [vmem:[#allocation2 + $0x7b0] sm:$0xff]  ;;  %v160_v1 = vld [vmem:[#allocation2 + $0x3b8] sm:$0xff] }
 0x4e4   :  { %812 = vmatpush.msra.mxu0 %v150_v27  ;;  %832 = vmatpush.msra.mxu1 %v278_v31  ;;  %v288_v26 = vld [vmem:[#allocation2 + $0x7b8] sm:$0xff]  ;;  %v151_v27 = vld [vmem:[#allocation2 + $0x370] sm:$0xff] }
 0x4e5   :  { %773 = vmatpush.msrb.mxu2 %v141_v32  ;;  %793 = vmatpush.msrb.mxu3 %v269_v34  ;;  %v279_v31 = vld [vmem:[#allocation2 + $0x770] sm:$0xff]  ;;  %v152_v32 = vld [vmem:[#allocation2 + $0x378] sm:$0xff] }
 0x4e6   :  { %813 = vmatpush.msra.mxu0 %v142_v35  ;;  %833 = vmatpush.msra.mxu1 %v270_v36  ;;  %v280_v34 = vld [vmem:[#allocation2 + $0x778] sm:$0xff]  ;;  %v143_v35 = vld [vmem:[#allocation2 + $0x330] sm:$0xff] }
 0x4e7   :  { %706 = vmatmul.f32.vlgmr.msra.gmra.mxu2 %v1111_v18  ;;  %726 = vmatmul.f32.vlgmr.msra.gmra.mxu3 %v1114_v19  ;;  %v271_v36 = vld [vmem:[#allocation2 + $0x730] sm:$0xff] }
 0x4e8   :  { %746 = vmatmul.f32.vlgmr.msrb.gmra.mxu0 %v1111_v18  ;;  %766 = vmatmul.f32.vlgmr.msrb.gmra.mxu1 %v1114_v19 }
 0x4e9   :  { %774 = vmatpush.msrb.mxu2 %v133_v37  ;;  %794 = vmatpush.msrb.mxu3 %v261_v38  ;;  %v144_v37 = vld [vmem:[#allocation2 + $0x338] sm:$0xff] }
 0x4ea   :  { %814 = vmatpush.msra.mxu0 %v134_v39  ;;  %834 = vmatpush.msra.mxu1 %v262_v40  ;;  %v272_v38 = vld [vmem:[#allocation2 + $0x738] sm:$0xff]  ;;  %v135_v39 = vld [vmem:[#allocation2 + $0x2f0] sm:$0xff] }
 0x4eb   :  { %775 = vmatpush.msrb.mxu2 %v125_v41  ;;  %795 = vmatpush.msrb.mxu3 %v253_v42  ;;  %v263_v40 = vld [vmem:[#allocation2 + $0x6f0] sm:$0xff]  ;;  %v136_v41 = vld [vmem:[#allocation2 + $0x2f8] sm:$0xff] }
 0x4ec   :  { %815 = vmatpush.msra.mxu0 %v126_v43  ;;  %835 = vmatpush.msra.mxu1 %v254_v29  ;;  %v264_v42 = vld [vmem:[#allocation2 + $0x6f8] sm:$0xff]  ;;  %v127_v43 = vld [vmem:[#allocation2 + $0x2b0] sm:$0xff] }
 0x4ed   :  { %776 = vmatpush.msrb.mxu2 %v117_v30  ;;  %796 = vmatpush.msrb.mxu3 %v245_v46  ;;  %v255_v29 = vld [vmem:[#allocation2 + $0x6b0] sm:$0xff]  ;;  %v128_v30 = vld [vmem:[#allocation2 + $0x2b8] sm:$0xff] }
 0x4ee   :  { %816 = vmatpush.msra.mxu0 %v118_v47  ;;  %836 = vmatpush.msra.mxu1 %v246_v48  ;;  %v256_v46 = vld [vmem:[#allocation2 + $0x6b8] sm:$0xff]  ;;  %v119_v47 = vld [vmem:[#allocation2 + $0x270] sm:$0xff] }
 0x4ef   :  { %777 = vmatpush.msrb.mxu2 %v109_v49  ;;  %797 = vmatpush.msrb.mxu3 %v237_v50  ;;  %v247_v48 = vld [vmem:[#allocation2 + $0x670] sm:$0xff]  ;;  %v120_v49 = vld [vmem:[#allocation2 + $0x278] sm:$0xff] }
 0x4f0   :  { %817 = vmatpush.msra.mxu0 %v110_v51  ;;  %837 = vmatpush.msra.mxu1 %v238_v52  ;;  %v248_v50 = vld [vmem:[#allocation2 + $0x678] sm:$0xff]  ;;  %v111_v51 = vld [vmem:[#allocation2 + $0x230] sm:$0xff] }
 0x4f1   :  { %778 = vmatpush.msrb.mxu2 %v101_v53  ;;  %798 = vmatpush.msrb.mxu3 %v229_v54  ;;  %v239_v52 = vld [vmem:[#allocation2 + $0x630] sm:$0xff]  ;;  %v112_v53 = vld [vmem:[#allocation2 + $0x238] sm:$0xff] }
 0x4f2   :  { %818 = vmatpush.msra.mxu0 %v102_v55  ;;  %838 = vmatpush.msra.mxu1 %v230_v44  ;;  %v240_v54 = vld [vmem:[#allocation2 + $0x638] sm:$0xff]  ;;  %v103_v55 = vld [vmem:[#allocation2 + $0x1f0] sm:$0xff] }
 0x4f3   :  { %779 = vmatpush.msrb.mxu2 %v93_v56  ;;  %799 = vmatpush.msrb.mxu3 %v221_v57  ;;  %v231_v44 = vld [vmem:[#allocation2 + $0x5f0] sm:$0xff]  ;;  %v104_v56 = vld [vmem:[#allocation2 + $0x1f8] sm:$0xff] }
 0x4f4   :  { %819 = vmatpush.msra.mxu0 %v94_v58  ;;  %839 = vmatpush.msra.mxu1 %v222_v59  ;;  %v232_v57 = vld [vmem:[#allocation2 + $0x5f8] sm:$0xff]  ;;  %v95_v58 = vld [vmem:[#allocation2 + $0x1b0] sm:$0xff] }
 0x4f5   :  { %780 = vmatpush.msrb.mxu2 %v85_v60  ;;  %800 = vmatpush.msrb.mxu3 %v213_v61  ;;  %v223_v59 = vld [vmem:[#allocation2 + $0x5b0] sm:$0xff]  ;;  %v96_v60 = vld [vmem:[#allocation2 + $0x1b8] sm:$0xff] }
 0x4f6   :  { %820 = vmatpush.msra.mxu0 %v86_v62  ;;  %840 = vmatpush.msra.mxu1 %v214_v63  ;;  %v224_v61 = vld [vmem:[#allocation2 + $0x5b8] sm:$0xff]  ;;  %v87_v62 = vld [vmem:[#allocation2 + $0x170] sm:$0xff] }
 0x4f7   :  { %781 = vmatpush.msrb.mxu2 %v77_v2  ;;  %801 = vmatpush.msrb.mxu3 %v205_v3  ;;  %v215_v63 = vld [vmem:[#allocation2 + $0x570] sm:$0xff]  ;;  %v88_v2 = vld [vmem:[#allocation2 + $0x178] sm:$0xff] }
 0x4f8   :  { %821 = vmatpush.msra.mxu0 %v78_v4  ;;  %841 = vmatpush.msra.mxu1 %v206_v5  ;;  %v216_v3 = vld [vmem:[#allocation2 + $0x578] sm:$0xff]  ;;  %v79_v4 = vld [vmem:[#allocation2 + $0x130] sm:$0xff] }
 0x4f9   :  { %782 = vmatpush.msrb.mxu2 %v69_v6  ;;  %802 = vmatpush.msrb.mxu3 %v197_v7  ;;  %v207_v5 = vld [vmem:[#allocation2 + $0x530] sm:$0xff]  ;;  %v80_v6 = vld [vmem:[#allocation2 + $0x138] sm:$0xff] }
 0x4fa   :  { %822 = vmatpush.msra.mxu0 %v70_v8  ;;  %842 = vmatpush.msra.mxu1 %v198_v9  ;;  %v208_v7 = vld [vmem:[#allocation2 + $0x538] sm:$0xff]  ;;  %v71_v8 = vld [vmem:[#allocation2 + $0xf0] sm:$0xff] }
 0x4fb   :  { %783 = vmatpush.msrb.mxu2 %v61_v28  ;;  %803 = vmatpush.msrb.mxu3 %v189_v10  ;;  %v199_v9 = vld [vmem:[#allocation2 + $0x4f0] sm:$0xff]  ;;  %v72_v28 = vld [vmem:[#allocation2 + $0xf8] sm:$0xff] }
 0x4fc   :  { %823 = vmatpush.msra.mxu0 %v62_v33  ;;  %843 = vmatpush.msra.mxu1 %v190_v11  ;;  %v200_v10 = vld [vmem:[#allocation2 + $0x4f8] sm:$0xff]  ;;  %v63_v33 = vld [vmem:[#allocation2 + $0xb0] sm:$0xff] }
 0x4fd   :  { %784 = vmatpush.msrb.mxu2 %v53_v12  ;;  %804 = vmatpush.msrb.mxu3 %v181_v13  ;;  %v191_v11 = vld [vmem:[#allocation2 + $0x4b0] sm:$0xff]  ;;  %v64_v12 = vld [vmem:[#allocation2 + $0xb8] sm:$0xff] }
 0x4fe   :  { %824 = vmatpush.msra.mxu0 %v54_v14  ;;  %844 = vmatpush.msra.mxu1 %v182_v15  ;;  %v192_v13 = vld [vmem:[#allocation2 + $0x4b8] sm:$0xff]  ;;  %v55_v14 = vld [vmem:[#allocation2 + $0x70] sm:$0xff] }
 0x4ff   :  { %785 = vmatpush.msrb.mxu2 %v45_v16  ;;  %805 = vmatpush.msrb.mxu3 %v173_v17  ;;  %v183_v15 = vld [vmem:[#allocation2 + $0x470] sm:$0xff]  ;;  %v56_v16 = vld [vmem:[#allocation2 + $0x78] sm:$0xff] }
 0x500   :  { %825 = vmatpush.msra.mxu0 %v46_v20  ;;  %845 = vmatpush.msra.mxu1 %v174_v21  ;;  %v184_v17 = vld [vmem:[#allocation2 + $0x478] sm:$0xff]  ;;  %v47_v20 = vld [vmem:[#allocation2 + $0x30] sm:$0xff] }
 0x501   :  { %786 = vmatmul.f32.vlgmr.msrb.gmra.mxu2 %v1111_v18  ;;  %806 = vmatmul.f32.vlgmr.msrb.gmra.mxu3 %v1114_v19  ;;  %v175_v21 = vld [vmem:[#allocation2 + $0x430] sm:$0xff] }
 0x502   :  { %826 = vmatmul.f32.vlgmr.msra.gmra.mxu0 %v1111_v18  ;;  %846 = vmatmul.f32.vlgmr.msra.gmra.mxu1 %v1114_v19 }
 0x503   :  { %850 = vmatpush.msra.mxu2 %v167_v22  ;;  %870 = vmatpush.msra.mxu3 %v295_v23  ;;  %v48_v22 = vld [vmem:[#allocation2 + $0x38] sm:$0xff] }
 0x504   :  { %890 = vmatpush.msrb.mxu0 %v168_v24  ;;  %910 = vmatpush.msrb.mxu1 %v296_v45  ;;  %v176_v23 = vld [vmem:[#allocation2 + $0x438] sm:$0xff] }
 0x505   :  { %851 = vmatpush.msra.mxu2 %v159_v0  ;;  %871 = vmatpush.msra.mxu3 %v287_v25 }
 0x506   :  { %891 = vmatpush.msrb.mxu0 %v160_v1  ;;  %911 = vmatpush.msrb.mxu1 %v288_v26 }
 0x507   :  { %852 = vmatpush.msra.mxu2 %v151_v27  ;;  %872 = vmatpush.msra.mxu3 %v279_v31 }
 0x508   :  { %892 = vmatpush.msrb.mxu0 %v152_v32  ;;  %912 = vmatpush.msrb.mxu1 %v280_v34 }
 0x509   :  { %853 = vmatpush.msra.mxu2 %v143_v35  ;;  %873 = vmatpush.msra.mxu3 %v271_v36 }
 0x50a   :  { %893 = vmatpush.msrb.mxu0 %v144_v37  ;;  %913 = vmatpush.msrb.mxu1 %v272_v38 }
 0x50b   :  { %854 = vmatpush.msra.mxu2 %v135_v39  ;;  %874 = vmatpush.msra.mxu3 %v263_v40 }
 0x50c   :  { %894 = vmatpush.msrb.mxu0 %v136_v41  ;;  %914 = vmatpush.msrb.mxu1 %v264_v42 }
 0x50d   :  { %855 = vmatpush.msra.mxu2 %v127_v43  ;;  %875 = vmatpush.msra.mxu3 %v255_v29 }
 0x50e   :  { %895 = vmatpush.msrb.mxu0 %v128_v30  ;;  %915 = vmatpush.msrb.mxu1 %v256_v46 }
 0x50f   :  { %856 = vmatpush.msra.mxu2 %v119_v47  ;;  %876 = vmatpush.msra.mxu3 %v247_v48 }
 0x510   :  { %896 = vmatpush.msrb.mxu0 %v120_v49  ;;  %916 = vmatpush.msrb.mxu1 %v248_v50 }
 0x511   :  { %857 = vmatpush.msra.mxu2 %v111_v51  ;;  %877 = vmatpush.msra.mxu3 %v239_v52 }
 0x512   :  { %897 = vmatpush.msrb.mxu0 %v112_v53  ;;  %917 = vmatpush.msrb.mxu1 %v240_v54 }
 0x513   :  { %858 = vmatpush.msra.mxu2 %v103_v55  ;;  %878 = vmatpush.msra.mxu3 %v231_v44 }
 0x514   :  { %898 = vmatpush.msrb.mxu0 %v104_v56  ;;  %918 = vmatpush.msrb.mxu1 %v232_v57 }
 0x515   :  { %859 = vmatpush.msra.mxu2 %v95_v58  ;;  %879 = vmatpush.msra.mxu3 %v223_v59 }
 0x516   :  { %899 = vmatpush.msrb.mxu0 %v96_v60  ;;  %919 = vmatpush.msrb.mxu1 %v224_v61 }
 0x517   :  { %860 = vmatpush.msra.mxu2 %v87_v62  ;;  %880 = vmatpush.msra.mxu3 %v215_v63 }
 0x518   :  { %900 = vmatpush.msrb.mxu0 %v88_v2  ;;  %920 = vmatpush.msrb.mxu1 %v216_v3 }
 0x519   :  { %861 = vmatpush.msra.mxu2 %v79_v4  ;;  %881 = vmatpush.msra.mxu3 %v207_v5 }
 0x51a   :  { %901 = vmatpush.msrb.mxu0 %v80_v6  ;;  %921 = vmatpush.msrb.mxu1 %v208_v7 }
 0x51b   :  { %862 = vmatpush.msra.mxu2 %v71_v8  ;;  %882 = vmatpush.msra.mxu3 %v199_v9 }
 0x51c   :  { %902 = vmatpush.msrb.mxu0 %v72_v28  ;;  %922 = vmatpush.msrb.mxu1 %v200_v10 }
 0x51d   :  { %863 = vmatpush.msra.mxu2 %v63_v33  ;;  %883 = vmatpush.msra.mxu3 %v191_v11 }
 0x51e   :  { %903 = vmatpush.msrb.mxu0 %v64_v12  ;;  %923 = vmatpush.msrb.mxu1 %v192_v13 }
 0x51f   :  { %864 = vmatpush.msra.mxu2 %v55_v14  ;;  %884 = vmatpush.msra.mxu3 %v183_v15 }
 0x520   :  { %904 = vmatpush.msrb.mxu0 %v56_v16  ;;  %924 = vmatpush.msrb.mxu1 %v184_v17 }
 0x521   :  { %865 = vmatpush.msra.mxu2 %v47_v20  ;;  %885 = vmatpush.msra.mxu3 %v175_v21 }
 0x522   :  { %905 = vmatpush.msrb.mxu0 %v48_v22  ;;  %925 = vmatpush.msrb.mxu1 %v176_v23 }
 0x523   :  { %866 = vmatmul.f32.vlgmr.msra.gmra.mxu2 %v1111_v18  ;;  %886 = vmatmul.f32.vlgmr.msra.gmra.mxu3 %v1114_v19 }
 0x524   :  { %906 = vmatmul.f32.vlgmr.msrb.gmra.mxu0 %v1111_v18  ;;  %926 = vmatmul.f32.vlgmr.msrb.gmra.mxu1 %v1114_v19 }
 0x55b   :  { %v667_v24 = vpop.f32.mrf.mxu0  ;;  %v687_v45 = vpop.f32.mrf.mxu1 }
 0x55c   :  { %v688_v0 = vadd.f32 %v687_v45, %v667_v24 }
 0x55e   :  { %931 = vst [vmem:[%s1162_s6 + $0x8] sm:$0xff] %v688_v0 }
 0x560   :  { %v627_v25 = vpop.f32.mrf.mxu2  ;;  %v647_v1 = vpop.f32.mrf.mxu3 }
 0x561   :  { %v648_v26 = vadd.f32 %v647_v1, %v627_v25 }
 0x563   :  { %930 = vst [vmem:[%s1162_s6] sm:$0xff] %v648_v26 }
 0x565   :  { %v747_v27 = vpop.f32.mrf.mxu0  ;;  %v767_v31 = vpop.f32.mrf.mxu1 }
 0x566   :  { %v768_v32 = vadd.f32 %v767_v31, %v747_v27 }
 0x568   :  { %933 = vst [vmem:[%s1162_s6 + $0x18] sm:$0xff] %v768_v32 }
 0x56a   :  { %v707_v18 = vpop.f32.mrf.mxu2  ;;  %v727_v19 = vpop.f32.mrf.mxu3 }
 0x56b   :  { %v728_v34 = vadd.f32 %v727_v19, %v707_v18 }
 0x56d   :  { %932 = vst [vmem:[%s1162_s6 + $0x10] sm:$0xff] %v728_v34 }
 0x57f   :  { %v827_v35 = vpop.f32.mrf.mxu0  ;;  %v847_v36 = vpop.f32.mrf.mxu1 }
 0x580   :  { %v848_v37 = vadd.f32 %v847_v36, %v827_v35 }
 0x582   :  { %935 = vst [vmem:[%s1162_s6 + $0x28] sm:$0xff] %v848_v37 }
 0x584   :  { %v787_v38 = vpop.f32.mrf.mxu2  ;;  %v807_v39 = vpop.f32.mrf.mxu3 }
 0x585   :  { %v808_v40 = vadd.f32 %v807_v39, %v787_v38 }
 0x587   :  { %934 = vst [vmem:[%s1162_s6 + $0x20] sm:$0xff] %v808_v40 }
 0x5a1   :  { %v907_v41 = vpop.f32.mrf.mxu0  ;;  %v927_v42 = vpop.f32.mrf.mxu1 }
 0x5a2   :  { %v928_v43 = vadd.f32 %v927_v42, %v907_v41 }
 0x5a4   :  { %937 = vst [vmem:[%s1162_s6 + $0x38] sm:$0xff] %v928_v43 }
 0x5a6   :  { %v867_v29 = vpop.f32.mrf.mxu2  ;;  %v887_v30 = vpop.f32.mrf.mxu3 }
 0x5a7   :  { %v888_v46 = vadd.f32 %v887_v30, %v867_v29 }
 0x5a9   :  { %936 = vst [vmem:[%s1162_s6 + $0x30] sm:$0xff] %v888_v46 }
 0x5aa   :  { %942 = vsyncpa [#allocation3], 1 }

</bundles_post_ra>
